<compile_context>
chip_gen: v5e
topology: v5e:2x2
jax: 0.10.0
libtpu: 0.0.40
codegen_flags: <defaults>
</compile_context>

<pallas_src>
import jax
import jax.numpy as jnp
from jax.experimental import pallas as pl
from jax.experimental.pallas import tpu as pltpu


def _round_up(x, m):
    return ((x + m - 1) // m) * m


def _head_kernel(x_ref, w1_ref, b1_ref, w2_ref, b2_ref, o_ref):
    # x:  [TB, H]  f32 (or bf16) — cast to bf16 in-kernel (VPU slack under MXU)
    # w1: [H, H]   bf16, pre-transposed to (in, out)
    # b1: [1, H]   f32
    # w2: [H, Lp]  bf16, pre-transposed, labels zero-padded to Lp (lane-dense)
    # b2: [1, Lp]  f32
    # o:  [TB, Lp] f32
    #
    # TODO(synk): dropout (p=0.1) is a no-op here (inference semantics); a
    # training-mode variant would add pltpu.prng_seed + pltpu.prng_random_bits masks.
    x = x_ref[...].astype(jnp.bfloat16)

    # dense: canonical MXU contraction (weights already (in, out)).
    h = jnp.dot(x, w1_ref[...], preferred_element_type=jnp.float32)
    h = jnp.tanh(h + b1_ref[...])            # bias + tanh in f32 (safe on v5e/v6e/v7x)
    h = h.astype(jnp.bfloat16)                # back to bf16 for the MXU

    # out_proj: [TB, H] @ [H, Lp] -> lane-dense [TB, Lp] output.
    out = jnp.dot(h, w2_ref[...], preferred_element_type=jnp.float32)
    o_ref[...] = (out + b2_ref[...]).astype(o_ref.dtype)


def prepare_head_params(dense_w, dense_b, out_w, out_b, *, lane_pad=128):
    """One-time param prep (do this at model-load, NOT per forward call).

    dense_w: [H, H] (PyTorch out x in), dense_b: [H]
    out_w:   [L, H] (PyTorch out x in), out_b:   [L]
    Weights are cast to bf16 and transposed once so the kernel always runs the
    canonical (M,K)x(K,N) MXU contraction.
    """
    H = dense_w.shape[0]
    L = out_w.shape[0]
    Lp = _round_up(L, lane_pad)

    w1 = dense_w.T.astype(jnp.bfloat16)                         # [H_in, H_out]
    b1 = dense_b.reshape(1, H).astype(jnp.float32)              # [1, H]
    w2 = jnp.zeros((H, Lp), jnp.bfloat16).at[:, :L].set(out_w.T.astype(jnp.bfloat16))
    b2 = jnp.zeros((1, Lp), jnp.float32).at[0, :L].set(out_b.astype(jnp.float32))
    return {"w1": w1, "b1": b1, "w2": w2, "b2": b2, "num_labels": L}


def _vmem_limit_bytes(tb, H, Lp, x_bytes, weight_bufs):
    bf16, f32 = 2, 4
    weights = H * H * bf16 + H * Lp * bf16 + H * f32 + Lp * f32
    io_tiles = 2 * (tb * H * x_bytes + tb * Lp * f32)           # double-buffered x / out
    need = weight_bufs * weights + io_tiles + (4 << 20)         # + compiler scratch headroom
    return int(min(max(need, 8 << 20), 32 << 20))


def _pick_batch_tile(B, block_b):
    """Sublane-aligned batch tile; guarantees >= 2 balanced grid steps when B > 8
    so the 'parallel' batch axis uses both TensorCores on v7x."""
    if B <= 8:
        return _round_up(B, 8)
    half = _round_up(pl.cdiv(B, 2), 8)
    return min(block_b, half)


def _build_call(B, H, Lp, TB, grid, weight_pipeline_mode, vmem_bytes, cost):
    def wspec(shape):
        if weight_pipeline_mode is None:
            return pl.BlockSpec(shape, lambda i: (0, 0))
        return pl.BlockSpec(shape, lambda i: (0, 0), pipeline_mode=weight_pipeline_mode)

    return pl.pallas_call(
        _head_kernel,
        out_shape=jax.ShapeDtypeStruct((B, Lp), jnp.float32),
        grid=grid,
        in_specs=[
            pl.BlockSpec((TB, H), lambda i: (i, 0)),   # x tile, pipelined over B
            wspec((H, H)),                             # weights resident across tiles
            wspec((1, H)),
            wspec((H, Lp)),
            wspec((1, Lp)),
        ],
        out_specs=pl.BlockSpec((TB, Lp), lambda i: (i, 0)),  # lane-dense (Lp=128) stores
        compiler_params=pltpu.CompilerParams(
            dimension_semantics=("parallel",),           # v7x: split batch over 2 TCs
            vmem_limit_bytes=vmem_bytes,
        ),
        cost_estimate=cost,
    )


def roberta_classification_head(features, params, *, block_b=512, return_padded=False):
    """features: [B, H] float32 (or bfloat16). params: output of prepare_head_params.
    Returns logits [B, num_labels] float32 (or the padded [B, Lp] if return_padded)."""
    B, H = features.shape
    w1, b1, w2, b2 = params["w1"], params["b1"], params["w2"], params["b2"]
    L = params["num_labels"]
    Lp = w2.shape[1]

    TB = _pick_batch_tile(B, block_b)
    grid = (pl.cdiv(B, TB),)
    x_bytes = jnp.dtype(features.dtype).itemsize

    cost = pl.CostEstimate(
        flops=2 * B * H * H + 2 * B * H * Lp,
        transcendentals=B * H,
        bytes_accessed=(B * H * x_bytes + H * H * 2 + H * Lp * 2
                        + H * 4 + Lp * 4 + B * Lp * 4),
    )

    args = (features, w1, b1, w2, b2)
    try:
        # Single-buffer the resident weights/biases (constant index_maps).
        out = _build_call(
            B, H, Lp, TB, grid, pl.Buffered(1),
            _vmem_limit_bytes(TB, H, Lp, x_bytes, weight_bufs=1), cost,
        )(*args)
    except Exception:
        # Fallback: default double-buffering (older jax / unsupported Buffered(1)).
        out = _build_call(
            B, H, Lp, TB, grid, None,
            _vmem_limit_bytes(TB, H, Lp, x_bytes, weight_bufs=2), cost,
        )(*args)

    if return_padded:
        # Padded label columns are exactly 0 — consumer must mask before softmax/argmax.
        return out
    return out[:, :L]


if __name__ == "__main__":
    # Small shapes consistent with the module: [batch, hidden] -> [batch, num_labels].
    # B=16 exercises the multi-tile (2 grid steps, both-TC) path.
    B, H, L = 16, 256, 3

    key = jax.random.PRNGKey(0)
    k_x, k_w1, k_b1, k_w2, k_b2 = jax.random.split(key, 5)

    features = jax.random.normal(k_x, (B, H), dtype=jnp.float32)
    dense_w = jax.random.normal(k_w1, (H, H), dtype=jnp.float32) * 0.02
    dense_b = jax.random.normal(k_b1, (H,), dtype=jnp.float32) * 0.02
    out_w = jax.random.normal(k_w2, (L, H), dtype=jnp.float32) * 0.02
    out_b = jax.random.normal(k_b2, (L,), dtype=jnp.float32) * 0.02

    params = prepare_head_params(dense_w, dense_b, out_w, out_b)   # one-time prep
    logits = roberta_classification_head(features, params)
    logits = jax.block_until_ready(logits)

    # Reference check (plain f32 JAX). bf16 matmul inputs with f32 accumulation
    # -> loosened tolerance vs the pure-f32 path.
    ref = jnp.tanh(features @ dense_w.T + dense_b) @ out_w.T + out_b
    assert logits.shape == (B, L)
    assert jnp.allclose(logits, ref, atol=2e-2, rtol=2e-2), float(
        jnp.max(jnp.abs(logits - ref))
    )

    print("KERNEL_OK")
</pallas_src>

<mosaic_0001>
module attributes {stable_mosaic.version = 11 : i64} {
  func.func @_head_kernel(%arg0: i32, %arg1: memref<8x256xf32, #tpu.memory_space<vmem>>, %arg2: memref<256x256xbf16, #tpu.memory_space<vmem>>, %arg3: memref<1x256xf32, #tpu.memory_space<vmem>>, %arg4: memref<256x128xbf16, #tpu.memory_space<vmem>>, %arg5: memref<1x128xf32, #tpu.memory_space<vmem>>, %arg6: memref<8x128xf32, #tpu.memory_space<vmem>>) attributes {dimension_semantics = [#tpu.dimension_semantics<parallel>], iteration_bounds = array<i64: 2>, scalar_prefetch = 0 : i64, scratch_operands = 0 : i64, tpu.core_type = #tpu.core_type<tc>, window_params = [{transform_indices = @transform_0, window_bounds = array<i64: 8, 256>}, {pipeline_mode = #tpu.pipeline_mode<synchronous>, transform_indices = @transform_1, window_bounds = array<i64: 256, 256>}, {pipeline_mode = #tpu.pipeline_mode<synchronous>, transform_indices = @transform_2, window_bounds = array<i64: 1, 256>}, {pipeline_mode = #tpu.pipeline_mode<synchronous>, transform_indices = @transform_3, window_bounds = array<i64: 256, 128>}, {pipeline_mode = #tpu.pipeline_mode<synchronous>, transform_indices = @transform_4, window_bounds = array<i64: 1, 128>}, {transform_indices = @transform_5, window_bounds = array<i64: 8, 128>}]} {
    %c0 = arith.constant 0 : index
    %c0_0 = arith.constant 0 : index
    %0 = vector.load %arg1[%c0, %c0_0] : memref<8x256xf32, #tpu.memory_space<vmem>>, vector<8x256xf32>
    %1 = arith.truncf %0 : vector<8x256xf32> to vector<8x256xbf16>
    %c0_1 = arith.constant 0 : index
    %c0_2 = arith.constant 0 : index
    %2 = vector.load %arg2[%c0_1, %c0_2] : memref<256x256xbf16, #tpu.memory_space<vmem>>, vector<256x256xbf16>
    %cst = arith.constant dense<0.000000e+00> : vector<8x256xf32>
    %3 = tpu.matmul %1, %2, %cst {dimension_numbers = #tpu.dot_dimension_numbers<[1], [0], [0], [1], [0, 0, 1, 1], [], []>} : vector<8x256xbf16>, vector<256x256xbf16>, vector<8x256xf32> -> vector<8x256xf32>
    %c0_3 = arith.constant 0 : index
    %c0_4 = arith.constant 0 : index
    %4 = vector.load %arg3[%c0_3, %c0_4] : memref<1x256xf32, #tpu.memory_space<vmem>>, vector<1x256xf32>
    %5 = vector.broadcast %4 : vector<1x256xf32> to vector<8x256xf32>
    %6 = arith.addf %3, %5 : vector<8x256xf32>
    %7 = math.tanh %6 : vector<8x256xf32>
    %8 = arith.truncf %7 : vector<8x256xf32> to vector<8x256xbf16>
    %c0_5 = arith.constant 0 : index
    %c0_6 = arith.constant 0 : index
    %9 = vector.load %arg4[%c0_5, %c0_6] : memref<256x128xbf16, #tpu.memory_space<vmem>>, vector<256x128xbf16>
    %cst_7 = arith.constant dense<0.000000e+00> : vector<8x128xf32>
    %10 = tpu.matmul %8, %9, %cst_7 {dimension_numbers = #tpu.dot_dimension_numbers<[1], [0], [0], [1], [0, 0, 1, 1], [], []>} : vector<8x256xbf16>, vector<256x128xbf16>, vector<8x128xf32> -> vector<8x128xf32>
    %c0_8 = arith.constant 0 : index
    %c0_9 = arith.constant 0 : index
    %11 = vector.load %arg5[%c0_8, %c0_9] : memref<1x128xf32, #tpu.memory_space<vmem>>, vector<1x128xf32>
    %12 = vector.broadcast %11 : vector<1x128xf32> to vector<8x128xf32>
    %13 = arith.addf %10, %12 : vector<8x128xf32>
    %c0_10 = arith.constant 0 : index
    %c0_11 = arith.constant 0 : index
    %14 = vector.load %arg6[%c0_10, %c0_11] : memref<8x128xf32, #tpu.memory_space<vmem>>, vector<8x128xf32>
    tpu.vector_store %arg6[%c0_10, %c0_11], %13 {strides = array<i32>} : memref<8x128xf32, #tpu.memory_space<vmem>>, vector<8x128xf32>,
    return
  }
  func.func @transform_0(%arg0: i32) -> (i32, i32) {
    %c0_i32 = arith.constant 0 : i32
    %c0_i32_0 = arith.constant 0 : i32
    return %arg0, %c0_i32 : i32, i32
  }
  func.func @transform_1(%arg0: i32) -> (i32, i32) {
    %c0_i32 = arith.constant 0 : i32
    %c0_i32_0 = arith.constant 0 : i32
    %c0_i32_1 = arith.constant 0 : i32
    return %c0_i32, %c0_i32_0 : i32, i32
  }
  func.func @transform_2(%arg0: i32) -> (i32, i32) {
    %c0_i32 = arith.constant 0 : i32
    %c0_i32_0 = arith.constant 0 : i32
    %c0_i32_1 = arith.constant 0 : i32
    return %c0_i32, %c0_i32_0 : i32, i32
  }
  func.func @transform_3(%arg0: i32) -> (i32, i32) {
    %c0_i32 = arith.constant 0 : i32
    %c0_i32_0 = arith.constant 0 : i32
    %c0_i32_1 = arith.constant 0 : i32
    return %c0_i32, %c0_i32_0 : i32, i32
  }
  func.func @transform_4(%arg0: i32) -> (i32, i32) {
    %c0_i32 = arith.constant 0 : i32
    %c0_i32_0 = arith.constant 0 : i32
    %c0_i32_1 = arith.constant 0 : i32
    return %c0_i32, %c0_i32_0 : i32, i32
  }
  func.func @transform_5(%arg0: i32) -> (i32, i32) {
    %c0_i32 = arith.constant 0 : i32
    %c0_i32_0 = arith.constant 0 : i32
    return %arg0, %c0_i32 : i32, i32
  }
}

module attributes {stable_mosaic.version = 11 : i64} {
  func.func @_head_kernel(%arg0: i32, %arg1: memref<8x256xf32, #tpu.memory_space<vmem>>, %arg2: memref<256x256xbf16, #tpu.memory_space<vmem>>, %arg3: memref<1x256xf32, #tpu.memory_space<vmem>>, %arg4: memref<256x128xbf16, #tpu.memory_space<vmem>>, %arg5: memref<1x128xf32, #tpu.memory_space<vmem>>, %arg6: memref<8x128xf32, #tpu.memory_space<vmem>>) attributes {dimension_semantics = [#tpu.dimension_semantics<parallel>], iteration_bounds = array<i64: 2>, scalar_prefetch = 0 : i64, scratch_operands = 0 : i64, tpu.core_type = #tpu.core_type<tc>, window_params = [{transform_indices = @transform_0, window_bounds = array<i64: 8, 256>}, {pipeline_mode = #tpu.pipeline_mode<synchronous>, transform_indices = @transform_1, window_bounds = array<i64: 256, 256>}, {pipeline_mode = #tpu.pipeline_mode<synchronous>, transform_indices = @transform_2, window_bounds = array<i64: 1, 256>}, {pipeline_mode = #tpu.pipeline_mode<synchronous>, transform_indices = @transform_3, window_bounds = array<i64: 256, 128>}, {pipeline_mode = #tpu.pipeline_mode<synchronous>, transform_indices = @transform_4, window_bounds = array<i64: 1, 128>}, {transform_indices = @transform_5, window_bounds = array<i64: 8, 128>}]} {
    %c0 = arith.constant 0 : index
    %c0_0 = arith.constant 0 : index
    %0 = vector.load %arg1[%c0, %c0_0] : memref<8x256xf32, #tpu.memory_space<vmem>>, vector<8x256xf32>
    %1 = arith.truncf %0 : vector<8x256xf32> to vector<8x256xbf16>
    %c0_1 = arith.constant 0 : index
    %c0_2 = arith.constant 0 : index
    %2 = vector.load %arg2[%c0_1, %c0_2] : memref<256x256xbf16, #tpu.memory_space<vmem>>, vector<256x256xbf16>
    %cst = arith.constant dense<0.000000e+00> : vector<8x256xf32>
    %3 = tpu.matmul %1, %2, %cst {dimension_numbers = #tpu.dot_dimension_numbers<[1], [0], [0], [1], [0, 0, 1, 1], [], []>} : vector<8x256xbf16>, vector<256x256xbf16>, vector<8x256xf32> -> vector<8x256xf32>
    %c0_3 = arith.constant 0 : index
    %c0_4 = arith.constant 0 : index
    %4 = vector.load %arg3[%c0_3, %c0_4] : memref<1x256xf32, #tpu.memory_space<vmem>>, vector<1x256xf32>
    %5 = vector.broadcast %4 : vector<1x256xf32> to vector<8x256xf32>
    %6 = arith.addf %3, %5 : vector<8x256xf32>
    %7 = math.tanh %6 : vector<8x256xf32>
    %8 = arith.truncf %7 : vector<8x256xf32> to vector<8x256xbf16>
    %c0_5 = arith.constant 0 : index
    %c0_6 = arith.constant 0 : index
    %9 = vector.load %arg4[%c0_5, %c0_6] : memref<256x128xbf16, #tpu.memory_space<vmem>>, vector<256x128xbf16>
    %cst_7 = arith.constant dense<0.000000e+00> : vector<8x128xf32>
    %10 = tpu.matmul %8, %9, %cst_7 {dimension_numbers = #tpu.dot_dimension_numbers<[1], [0], [0], [1], [0, 0, 1, 1], [], []>} : vector<8x256xbf16>, vector<256x128xbf16>, vector<8x128xf32> -> vector<8x128xf32>
    %c0_8 = arith.constant 0 : index
    %c0_9 = arith.constant 0 : index
    %11 = vector.load %arg5[%c0_8, %c0_9] : memref<1x128xf32, #tpu.memory_space<vmem>>, vector<1x128xf32>
    %12 = vector.broadcast %11 : vector<1x128xf32> to vector<8x128xf32>
    %13 = arith.addf %10, %12 : vector<8x128xf32>
    %c0_10 = arith.constant 0 : index
    %c0_11 = arith.constant 0 : index
    %14 = vector.load %arg6[%c0_10, %c0_11] : memref<8x128xf32, #tpu.memory_space<vmem>>, vector<8x128xf32>
    tpu.vector_store %arg6[%c0_10, %c0_11], %13 {strides = array<i32>} : memref<8x128xf32, #tpu.memory_space<vmem>>, vector<8x128xf32>,
    return
  }
  func.func @transform_0(%arg0: i32) -> (i32, i32) {
    %c0_i32 = arith.constant 0 : i32
    %c0_i32_0 = arith.constant 0 : i32
    return %arg0, %c0_i32 : i32, i32
  }
  func.func @transform_1(%arg0: i32) -> (i32, i32) {
    %c0_i32 = arith.constant 0 : i32
    %c0_i32_0 = arith.constant 0 : i32
    %c0_i32_1 = arith.constant 0 : i32
    return %c0_i32, %c0_i32_0 : i32, i32
  }
  func.func @transform_2(%arg0: i32) -> (i32, i32) {
    %c0_i32 = arith.constant 0 : i32
    %c0_i32_0 = arith.constant 0 : i32
    %c0_i32_1 = arith.constant 0 : i32
    return %c0_i32, %c0_i32_0 : i32, i32
  }
  func.func @transform_3(%arg0: i32) -> (i32, i32) {
    %c0_i32 = arith.constant 0 : i32
    %c0_i32_0 = arith.constant 0 : i32
    %c0_i32_1 = arith.constant 0 : i32
    return %c0_i32, %c0_i32_0 : i32, i32
  }
  func.func @transform_4(%arg0: i32) -> (i32, i32) {
    %c0_i32 = arith.constant 0 : i32
    %c0_i32_0 = arith.constant 0 : i32
    %c0_i32_1 = arith.constant 0 : i32
    return %c0_i32, %c0_i32_0 : i32, i32
  }
  func.func @transform_5(%arg0: i32) -> (i32, i32) {
    %c0_i32 = arith.constant 0 : i32
    %c0_i32_0 = arith.constant 0 : i32
    return %arg0, %c0_i32 : i32, i32
  }
}

</mosaic_0001>

<bundles_post_ra>
// kernel: tpu_custom_call.1
= control target key start
LH: loop header
LB: loop body
LE: loop exit
PB: predicated region body
PF: predicated region fallthrough
CT: control target
= control target key end

     0   :  { %10 = vsyncpa [#allocation3], 0  ;;  %s1566_s0 = inlined_call_operand.hbm [shape: f32[16,256], index: 0, kind: input, shape index: {}]   ;;  %s1567_s1 = inlined_call_operand.hbm [shape: bf16[256,256], index: 1, kind: input, shape index: {}]   ;;  %s1568_s2 = inlined_call_operand.hbm [shape: f32[1,256], index: 2, kind: input, shape index: {}]   ;;  %s1569_s3 = inlined_call_operand.hbm [shape: bf16[256,128], index: 3, kind: input, shape index: {}]   ;;  %s1570_s4 = inlined_call_operand.vmem [shape: f32[1,128], index: 4, kind: input, shape index: {}]   ;;  %s1571_s5 = inlined_call_operand.hbm [shape: f32[16,128], index: 5, kind: output, shape index: {}]  }
   0x1   :  { %12 = vsyncpa [#allocation3 + $0x1], 0 }
   0x2   :  { %13 = vsyncpa [#allocation6], 0 }
   0x3   :  { %14 = vsyncpa [#allocation9], 0 }
   0x4   :  { %15 = vsyncpa [#allocation4], 0 }
   0x5   :  { %17 = vsyncpa [#allocation4 + $0x1], 0  ;;  %s1402_s18 = smov 0   ;;  %s1404_s19 = smov 0  }
   0x6   :  { %s1406_s20 = smov 0   ;;  %s1408_s21 = smov 0  }
   0x7 LB: > { %s175_s24 = sshll.u32 %s1567_s1, 4  ;;  %s1426_s25 = sadd.s32 4294967295, %s1363_s21   ;;  %s1363_s21 = sphi %s1408_s21, %s1582_s21   ;;  %s1359_s20 = sphi %s1406_s20, %s1581_s20   ;;  %s1355_s19 = sphi %s1404_s19, %s1580_s19   ;;  %s1351_s18 = sphi %s1402_s18, %s1579_s18   ;;  %s176_s24 = int_to_ptr.hbm [resolvable:$true] %s175_s24 }
   0x8   : > { %p824_p0 = scmp.ge.s32.totalorder %s1363_s21, 1  ;;  %p44_p1 = scmp.eq.s32.totalorder %s1426_s25, 0 }
   0x9   : > { %p164_p2 = scmp.lt.s32.totalorder %s1363_s21, 3  ;;  %s1365_s27 = smov [#allocation5]  }
   0xa   : > { %s177_s28 = sshll.u32 %s1365_s27, 4  ;;  %s190_s6 = sshll.u32 %s1568_s2, 4  ;;  %s178_s28 = int_to_ptr.vmem [resolvable:$true] %s177_s28  ;;  %s191_s6 = int_to_ptr.hbm [resolvable:$true] %s190_s6 }
   0xb   : > { %p1431_p3 = pnand %p824_p0, %p164_p2  ;;  %s201_s10 = sshll.u32 %s1569_s3, 4  ;;  %s202_s10 = int_to_ptr.hbm [resolvable:$true] %s201_s10 }
   0xc   : > { %s1366_s11 = smov [#allocation7]   ;;  %s1367_s13 = smov 128  }
   0xd   : > { %p1099_p4 = pneg %p1431_p3  ;;  %s192_s12 = sshll.u32 %s1366_s11, 4  ;;  %s193_s12 = int_to_ptr.vmem [resolvable:$true] %s192_s12 }
   0xe   : > { %s1368_s14 = smov 8   ;;  %s1369_s15 = smov [#allocation8]  }
   0xf   : > { %p1443_p6 = pnand %p1099_p4, %p44_p1  ;;  %s203_s16 = sshll.u32 %s1369_s15, 4  ;;  %s204_s16 = int_to_ptr.vmem [resolvable:$true] %s203_s16 }
  0x10   : > { %s1370_s17 = smov 64   ;;  %s1371_s22 = smov 4  }
  0x11   : > { %1102 = dma.hbm_to_vmem [thread:$0]  (!%p1443_p6), %s176_s24, 4096, %s178_s28, [#allocation6], %s1367_s13, %s1367_s13, %s1368_s14  }
  0x12   : > { %1105 = dma.hbm_to_vmem [thread:$0]  (!%p1443_p6), %s191_s6, 32, %s193_s12, [#allocation6]  }
  0x13   : > { %1108 = dma.hbm_to_vmem [thread:$0]  (!%p1443_p6), %s202_s10, 2048, %s204_s16, [#allocation9], %s1370_s17, %s1370_s17, %s1371_s22  }
  0x14   : > { %s823_s23 = sadd.s32 4294967294, %s1363_s21   ;;  %s1458_s24 = sadd.s32 1, %s1363_s21  }
  0x15   : > { %s30_s27 = sadd.s32 1, %s1359_s20  ;;  %s27_s28 = ssub.s32 %s1363_s21, %s1458_s24 }
  0x16   : > { %p37_p7 = scmp.ne.s32.totalorder %s1359_s20, %s1355_s19  ;;  %p28_p8 = scmp.eq.s32.totalorder %s27_s28, 0 }
  0x17   : > { %p38_p9 = scmp.eq.s32.totalorder %s1363_s21, 0  ;;  %p43_p10 = scmp.ne.s32.totalorder %s1355_s19, %s1351_s18 }
  0x18   : > { %p151_p11 = scmp.eq.s32.totalorder %s1426_s25, 1  ;;  %p157_p0 = scmp.eq.s32.totalorder %s823_s23, 1 }
  0x19   : > { %s1470_s29 = scalar_select %p28_p8, %s1359_s20, %s30_s27  }
  0x1a   : > { %p1474_p12 = por %p44_p1, %p43_p10  ;;  %p1478_p13 = por %p151_p11, %p37_p7 }
  0x1b   : > { %p39_p2 = por %p38_p9, %p37_p7  ;;  %s220_s7 = sand.u32 1, %s1359_s20  }
  0x1c   : > { %p1483_p4 = por %p157_p0, %p43_p10  ;;  %p1120_p6 = scmp.lt.s32.totalorder %s1363_s21, 2 }
  0x1d   : > { %s829_s9 = sshll.u32 %s220_s7, 4  ;;  %s1034_s10 = sshll.u32 %s1363_s21, 4 }
  0x1e   : > { %s229_s13 = scalar_lea.hbm %s1566_s0, %s1034_s10  ;;  %s224_s15 = scalar_lea.vmem [#allocation2], %s829_s9 }
  0x1f   : > { %s231_s14 = sshll.u32 %s229_s13, 4  ;;  %s233_s16 = sshll.u32 %s224_s15, 4  ;;  %s232_s14 = int_to_ptr.hbm [resolvable:$true] %s231_s14  ;;  %s234_s16 = int_to_ptr.vmem [resolvable:$true] %s233_s16 }
  0x20   : > { %p1492_p8 = pnand %p1120_p6, %p39_p2  ;;  %s221_s22 = scalar_lea.sflag [#allocation3], %s220_s7 }
  0x21   : > { %s1259_s23 = sshra.s32 %s232_s14, 4  ;;  %s1266_s9 = scalar_lea.hbm %s1566_s0, 32  ;;  %s1260_s23 = int_to_ptr.hbm [resolvable:$true] %s1259_s23 }
  0x22   : > { %s1261_s27 = scalar_lea.hbm %s1260_s23, 16  ;;  %p1263_p9 = pneg %p1492_p8 }
  0x23   : > { %p1262_p7 = scmp.ne.s32.totalorder %s1260_s23, %s1261_s27  ;;  %p1267_p0 = scmp.lt.s32.totalorder %s1260_s23, %s1566_s0 }
  0x24   : > { %p1268_p2 = scmp.lt.s32.totalorder %s1266_s9, %s1261_s27 }
  0x25   : > { %p1264_p10 = pnand %p1263_p9, %p1262_p7 }
  0x26   : > { %p1269_p6 = por %p1268_p2, %p1267_p0 }
  0x27   : > { %p1265_p11 = pneg %p1264_p10 }
  0x29   : > { %p1270_p5 = pnand %p1269_p6, %p1265_p11 }
  0x2b   : > { %1273 = shalt.err (!%p1270_p5)
}
  0x2c   : > { %1112 = dma.hbm_to_vmem [thread:$0]  (!%p1492_p8), %s232_s14, 256, %s234_s16, %s221_s22  }
  0x2d   : > { %242 = sbr.rel (%p1431_p3) target bundleno = 370 (0x172), region = 40  ;;  %s1509_s7 = sand.u32 (!%p1431_p3), 1, %s1355_s19  }
  0x2e   : > { %s833_s13 = sshll.u32 (!%p1431_p3), %s1509_s7, 4  ;;  %s245_s15 = scalar_lea.sflag (!%p1431_p3), [#allocation3], %s1509_s7 }
  0x2f   : > { %s1513_s28 = scalar_lea.vmem (!%p1431_p3), [#allocation2], %s833_s13 }
  0x32   : > { %1334 = dma.done.wait (%p1474_p12), %s245_s15, 256  }
  0x33   : > { %1336 = vsyncadd (%p1474_p12), %s245_s15, 4294967040 }
  0x34   : > { %1338 = dma.done.wait (%p44_p1), [#allocation6], 4128  }
  0x35   : > { %1340 = vsyncadd (%p44_p1), [#allocation6], 4294963168 }
  0x36   : > { %1342 = dma.done.wait (%p44_p1), [#allocation9], 2048  }
  0x37   : > { %1344 = vsyncadd (%p44_p1), [#allocation9], 4294965248  ;;  %v896_v0 = vld [vmem:[#allocation5 + $0x70] sm:$0xf]  ;;  %v1050_v1 = vld [vmem:[#allocation5 + $0x74] sm:$0xf0] }
  0x38   : > { %v960_v2 = vld [vmem:[#allocation5 + $0xf0] sm:$0xf]  ;;  %v897_v3 = vor.u32 %v1050_v1, %v896_v0  ;;  %v1066_v4 = vld [vmem:[#allocation5 + $0xf4] sm:$0xf0]  ;;  %v1049_v5 = vld [vmem:[#allocation5 + $0x74] sm:$0xf] }
  0x39   : > { %v898_v6 = vld [vmem:[#allocation5 + $0x78] sm:$0xf0]  ;;  %v961_v7 = vor.u32 %v1066_v4, %v960_v2  ;;  %v1065_v9 = vld [vmem:[#allocation5 + $0xf4] sm:$0xf]  ;;  %v888_v11 = vld [vmem:[#allocation5 + $0x60] sm:$0xf] }
  0x3a   : > { %v901_v8 = vor.u32 %v1049_v5, %v898_v6  ;;  %v962_v10 = vld [vmem:[#allocation5 + $0xf8] sm:$0xf0]  ;;  %493 = vmatpush.bf16.msra.mxu0 %v897_v3  ;;  %v1048_v13 = vld [vmem:[#allocation5 + $0x64] sm:$0xf0]  ;;  %v952_v14 = vld [vmem:[#allocation5 + $0xe0] sm:$0xf] }
  0x3b   : > { %v965_v12 = vor.u32 %v1065_v9, %v962_v10  ;;  %v1064_v15 = vld [vmem:[#allocation5 + $0xe4] sm:$0xf0]  ;;  %506 = vmatpush.bf16.msra.mxu1 %v961_v7  ;;  %v889_v16 = vor.u32 %v1048_v13, %v888_v11  ;;  %v1047_v18 = vld [vmem:[#allocation5 + $0x64] sm:$0xf]  ;;  %v890_v19 = vld [vmem:[#allocation5 + $0x68] sm:$0xf0] }
  0x3c   : > { %519 = vmatpush.bf16.msra.mxu2 %v901_v8  ;;  %v953_v17 = vor.u32 %v1064_v15, %v952_v14  ;;  %v1063_v20 = vld [vmem:[#allocation5 + $0xe4] sm:$0xf]  ;;  %v893_v21 = vor.u32 %v1047_v18, %v890_v19  ;;  %v954_v22 = vld [vmem:[#allocation5 + $0xe8] sm:$0xf0]  ;;  %v880_v23 = vld [vmem:[#allocation5 + $0x50] sm:$0xf] }
  0x3d   : > { %532 = vmatpush.bf16.msra.mxu3 %v965_v12  ;;  %v1046_v24 = vld [vmem:[#allocation5 + $0x54] sm:$0xf0]  ;;  %v957_v25 = vor.u32 %v1063_v20, %v954_v22  ;;  %v944_v26 = vld [vmem:[#allocation5 + $0xd0] sm:$0xf]  ;;  %v1045_v28 = vld [vmem:[#allocation5 + $0x54] sm:$0xf] }
  0x3e   : > { %v1062_v27 = vld [vmem:[#allocation5 + $0xd4] sm:$0xf0]  ;;  %494 = vmatpush.bf16.msra.mxu0 %v889_v16  ;;  %v881_v29 = vor.u32 %v1046_v24, %v880_v23  ;;  %v882_v30 = vld [vmem:[#allocation5 + $0x58] sm:$0xf0]  ;;  %v1061_v31 = vld [vmem:[#allocation5 + $0xd4] sm:$0xf] }
  0x3f   : > { %v946_v32 = vld [vmem:[#allocation5 + $0xd8] sm:$0xf0]  ;;  %507 = vmatpush.bf16.msra.mxu1 %v953_v17  ;;  %v945_v33 = vor.u32 %v1062_v27, %v944_v26  ;;  %v885_v34 = vor.u32 %v1045_v28, %v882_v30  ;;  %v872_v35 = vld [vmem:[#allocation5 + $0x40] sm:$0xf]  ;;  %v1044_v36 = vld [vmem:[#allocation5 + $0x44] sm:$0xf0] }
  0x40   : > { %520 = vmatpush.bf16.msra.mxu2 %v893_v21  ;;  %v936_v37 = vld [vmem:[#allocation5 + $0xc0] sm:$0xf]  ;;  %v949_v38 = vor.u32 %v1061_v31, %v946_v32  ;;  %v1060_v39 = vld [vmem:[#allocation5 + $0xc4] sm:$0xf0]  ;;  %v1043_v40 = vld [vmem:[#allocation5 + $0x44] sm:$0xf]  ;;  %v873_v44 = vor.u32 %v1044_v36, %v872_v35 }
  0x41   : > { %533 = vmatpush.bf16.msra.mxu3 %v957_v25  ;;  %v874_v41 = vld [vmem:[#allocation5 + $0x48] sm:$0xf0]  ;;  %v1059_v42 = vld [vmem:[#allocation5 + $0xc4] sm:$0xf]  ;;  %v937_v45 = vor.u32 %v1060_v39, %v936_v37  ;;  %v864_v47 = vld [vmem:[#allocation5 + $0x30] sm:$0xf] }
  0x42   : > { %v938_v43 = vld [vmem:[#allocation5 + $0xc8] sm:$0xf0]  ;;  %495 = vmatpush.bf16.msra.mxu0 %v881_v29  ;;  %v877_v46 = vor.u32 %v1043_v40, %v874_v41  ;;  %v1042_v48 = vld [vmem:[#allocation5 + $0x34] sm:$0xf0]  ;;  %v928_v49 = vld [vmem:[#allocation5 + $0xb0] sm:$0xf] }
  0x43   : > { %508 = vmatpush.bf16.msra.mxu1 %v945_v33  ;;  %v941_v50 = vor.u32 %v1059_v42, %v938_v43  ;;  %v1058_v51 = vld [vmem:[#allocation5 + $0xb4] sm:$0xf0]  ;;  %v1041_v52 = vld [vmem:[#allocation5 + $0x34] sm:$0xf]  ;;  %v866_v53 = vld [vmem:[#allocation5 + $0x38] sm:$0xf0]  ;;  %v865_v56 = vor.u32 %v1042_v48, %v864_v47 }
  0x44   : > { %521 = vmatpush.bf16.msra.mxu2 %v885_v34  ;;  %v1057_v54 = vld [vmem:[#allocation5 + $0xb4] sm:$0xf]  ;;  %v930_v55 = vld [vmem:[#allocation5 + $0xb8] sm:$0xf0]  ;;  %v929_v57 = vor.u32 %v1058_v51, %v928_v49  ;;  %v869_v58 = vor.u32 %v1041_v52, %v866_v53  ;;  %v856_v59 = vld [vmem:[#allocation5 + $0x20] sm:$0xf] }
  0x45   : > { %534 = vmatpush.bf16.msra.mxu3 %v949_v38  ;;  %v1040_v60 = vld [vmem:[#allocation5 + $0x24] sm:$0xf0]  ;;  %v920_v61 = vld [vmem:[#allocation5 + $0xa0] sm:$0xf]  ;;  %v933_v62 = vor.u32 %v1057_v54, %v930_v55  ;;  %v1039_v0 = vld [vmem:[#allocation5 + $0x24] sm:$0xf] }
  0x46   : > { %496 = vmatpush.bf16.msra.mxu0 %v873_v44  ;;  %v1056_v63 = vld [vmem:[#allocation5 + $0xa4] sm:$0xf0]  ;;  %v858_v1 = vld [vmem:[#allocation5 + $0x28] sm:$0xf0]  ;;  %v1055_v2 = vld [vmem:[#allocation5 + $0xa4] sm:$0xf]  ;;  %v857_v4 = vor.u32 %v1040_v60, %v856_v59 }
  0x47   : > { %509 = vmatpush.bf16.msra.mxu1 %v937_v45  ;;  %v922_v3 = vld [vmem:[#allocation5 + $0xa8] sm:$0xf0]  ;;  %v921_v5 = vor.u32 %v1056_v63, %v920_v61  ;;  %v861_v6 = vor.u32 %v1039_v0, %v858_v1  ;;  %v848_v7 = vld [vmem:[#allocation5 + $0x10] sm:$0xf]  ;;  %v1038_v8 = vld [vmem:[#allocation5 + $0x14] sm:$0xf0] }
  0x48   : > { %522 = vmatpush.bf16.msra.mxu2 %v877_v46  ;;  %v912_v9 = vld [vmem:[#allocation5 + $0x90] sm:$0xf]  ;;  %v925_v10 = vor.u32 %v1055_v2, %v922_v3  ;;  %v1054_v11 = vld [vmem:[#allocation5 + $0x94] sm:$0xf0]  ;;  %v1037_v12 = vld [vmem:[#allocation5 + $0x14] sm:$0xf]  ;;  %v849_v16 = vor.u32 %v1038_v8, %v848_v7 }
  0x49   : > { %535 = vmatpush.bf16.msra.mxu3 %v941_v50  ;;  %v850_v13 = vld [vmem:[#allocation5 + $0x18] sm:$0xf0]  ;;  %v1053_v14 = vld [vmem:[#allocation5 + $0x94] sm:$0xf]  ;;  %v840_v17 = vld [vmem:[#allocation5] sm:$0xf]  ;;  %v913_v18 = vor.u32 %v1054_v11, %v912_v9 }
  0x4a   : > { %497 = vmatpush.bf16.msra.mxu0 %v865_v56  ;;  %v914_v15 = vld [vmem:[#allocation5 + $0x98] sm:$0xf0]  ;;  %v853_v19 = vor.u32 %v1037_v12, %v850_v13  ;;  %v1036_v20 = vld [vmem:[#allocation5 + $0x4] sm:$0xf0]  ;;  %v904_v21 = vld [vmem:[#allocation5 + $0x80] sm:$0xf] }
  0x4b   : > { %510 = vmatpush.bf16.msra.mxu1 %v929_v57  ;;  %v1052_v22 = vld [vmem:[#allocation5 + $0x84] sm:$0xf0]  ;;  %v917_v23 = vor.u32 %v1053_v14, %v914_v15  ;;  %v1035_v24 = vld [vmem:[#allocation5 + $0x4] sm:$0xf]  ;;  %v842_v25 = vld [vmem:[#allocation5 + $0x8] sm:$0xf0]  ;;  %v841_v28 = vor.u32 %v1036_v20, %v840_v17 }
  0x4c   : > { %523 = vmatpush.bf16.msra.mxu2 %v869_v58  ;;  %v1051_v26 = vld [vmem:[#allocation5 + $0x84] sm:$0xf]  ;;  %v906_v27 = vld [vmem:[#allocation5 + $0x88] sm:$0xf0]  ;;  %v905_v30 = vor.u32 %v1052_v22, %v904_v21  ;;  %v845_v31 = vor.u32 %v1035_v24, %v842_v25  ;;  %v1074_v34 = vld [vmem:[#allocation8 + $0x38] sm:$0xff]  ;;  %s1031_s26 = sshll.u32 %s1426_s25, 3 }
  0x4d   : > { %536 = vmatpush.bf16.msra.mxu3 %v933_v62  ;;  %v291_v29 = vld [vmem:[%s1513_s28] sm:$0xff]  ;;  %v292_v32 = vld [vmem:[%s1513_s28 + $0x8] sm:$0xff]  ;;  %v909_v33 = vor.u32 %v1051_v26, %v906_v27  ;;  %s837_s16 = sshll.u32 %s1509_s7, 3  ;;  %s719_s23 = scalar_lea.hbm %s1571_s5, %s1031_s26 }
  0x4e   : > { %498 = vmatpush.bf16.msra.mxu0 %v857_v4  ;;  %v293_v35 = vpack.c.bf16 %v291_v29, %v291_v29  ;;  %v1082_v36 = vld [vmem:[#allocation8 + $0x78] sm:$0xff]  ;;  %v294_v37 = vpack.c.bf16 %v292_v32, %v292_v32  ;;  %v1073_v38 = vld [vmem:[#allocation8 + $0x30] sm:$0xff]  ;;  %v1072_v40 = vld [vmem:[#allocation8 + $0x28] sm:$0xff]  ;;  %s290_s27 = scalar_lea.vmem [#allocation10], %s837_s16  ;;  %s723_s9 = sshll.u32 %s719_s23, 4  ;;  %s724_s9 = int_to_ptr.hbm [resolvable:$true] %s723_s9 }
  0x4f   : > { %511 = vmatpush.bf16.msra.mxu1 %v921_v5  ;;  %v1081_v39 = vld [vmem:[#allocation8 + $0x70] sm:$0xff]  ;;  %v1080_v41 = vld [vmem:[#allocation8 + $0x68] sm:$0xff]  ;;  %v1071_v42 = vld [vmem:[#allocation8 + $0x20] sm:$0xff]  ;;  %s721_s10 = sshll.u32 %s290_s27, 4  ;;  %s709_s25 = scalar_lea.sflag [#allocation4], %s1509_s7  ;;  %s722_s10 = int_to_ptr.vmem [resolvable:$true] %s721_s10 }
  0x50   : > { %524 = vmatpush.bf16.msra.mxu2 %v861_v6  ;;  %v1070_v43 = vld [vmem:[#allocation8 + $0x18] sm:$0xff]  ;;  %v1079_v44 = vld [vmem:[#allocation8 + $0x60] sm:$0xff]  ;;  %v1069_v45 = vld [vmem:[#allocation8 + $0x10] sm:$0xff]  ;;  %s1303_s11 = sshra.s32 %s724_s9, 4  ;;  %s1309_s28 = scalar_lea.hbm %s1571_s5, 16  ;;  %s1304_s11 = int_to_ptr.hbm [resolvable:$true] %s1303_s11 }
  0x51   : > { %537 = vmatpush.bf16.msra.mxu3 %v925_v10  ;;  %v1078_v46 = vld [vmem:[#allocation8 + $0x58] sm:$0xff]  ;;  %v1068_v47 = vld [vmem:[#allocation8 + $0x8] sm:$0xff]  ;;  %v1077_v48 = vld [vmem:[#allocation8 + $0x50] sm:$0xff]  ;;  %s1305_s12 = scalar_lea.hbm %s1304_s11, 8  ;;  %p1310_p12 = scmp.lt.s32.totalorder %s1304_s11, %s1571_s5 }
  0x52   : > { %499 = vmatpush.bf16.msra.mxu0 %v849_v16  ;;  %v1067_v49 = vld [vmem:[#allocation8] sm:$0xff]  ;;  %v1076_v50 = vld [vmem:[#allocation8 + $0x48] sm:$0xff]  ;;  %v327_v52 = vld [vmem:[#allocation7] sm:$0x3]  ;;  %p1306_p1 = scmp.ne.s32.totalorder %s1304_s11, %s1305_s12  ;;  %p1311_p8 = scmp.lt.s32.totalorder %s1309_s28, %s1305_s12 }
  0x53   : > { %512 = vmatpush.bf16.msra.mxu1 %v913_v18  ;;  %v1075_v51 = vld [vmem:[#allocation8 + $0x40] sm:$0xff]  ;;  %v329_v53 = vperm.slane %v327_v52, 0  ;;  %v330_v58 = vperm.slane %v327_v52, 1  ;;  %v1164_v7 = vld [vmem:[%s1570_s4] ss:$0 sm:$0xff] }
  0x54   : > { %525 = vmatpush.bf16.msra.mxu2 %v853_v19  ;;  %p1307_p3 = pnand %p1306_p1, %p1478_p13  ;;  %p1312_p7 = por %p1311_p8, %p1310_p12 }
  0x55   : > { %538 = vmatpush.bf16.msra.mxu3 %v917_v23 }
  0x56   : > { %500 = vmatpush.bf16.msra.mxu0 %v841_v28  ;;  %p1308_p5 = pneg %p1307_p3 }
  0x57   : > { %513 = vmatpush.bf16.msra.mxu1 %v905_v30 }
  0x58   : > { %526 = vmatpush.bf16.msra.mxu2 %v845_v31  ;;  %p1313_p9 = pnand %p1312_p7, %p1308_p5 }
  0x59   : > { %539 = vmatpush.bf16.msra.mxu3 %v909_v33  ;;  %501 = vmatmul.bf16.vlgmr.msra.gmra.mxu0 %v293_v35 }
  0x5a   : > { %681 = vmatpush.bf16.msrb.mxu0 %v1074_v34  ;;  %514 = vmatmul.bf16.vlgmr.msra.gmra.mxu1 %v294_v37 }
  0x5b   : > { %694 = vmatpush.bf16.msrb.mxu1 %v1082_v36  ;;  %527 = vmatmul.bf16.vlgmr.msra.gmra.mxu2 %v293_v35 }
  0x5c   : > { %540 = vmatmul.bf16.vlgmr.msra.gmra.mxu3 %v294_v37 }
  0x5e   : > { %682 = vmatpush.bf16.msrb.mxu0 %v1073_v38 }
  0x5f   : > { %695 = vmatpush.bf16.msrb.mxu1 %v1081_v39 }
  0x62   : > { %683 = vmatpush.bf16.msrb.mxu0 %v1072_v40 }
  0x63   : > { %696 = vmatpush.bf16.msrb.mxu1 %v1080_v41 }
  0x66   : > { %684 = vmatpush.bf16.msrb.mxu0 %v1071_v42 }
  0x67   : > { %697 = vmatpush.bf16.msrb.mxu1 %v1079_v44 }
  0x6a   : > { %685 = vmatpush.bf16.msrb.mxu0 %v1070_v43 }
  0x6b   : > { %698 = vmatpush.bf16.msrb.mxu1 %v1078_v46 }
  0x6e   : > { %686 = vmatpush.bf16.msrb.mxu0 %v1069_v45 }
  0x6f   : > { %699 = vmatpush.bf16.msrb.mxu1 %v1077_v48 }
  0x72   : > { %687 = vmatpush.bf16.msrb.mxu0 %v1068_v47 }
  0x73   : > { %700 = vmatpush.bf16.msrb.mxu1 %v1076_v50 }
  0x76   : > { %688 = vmatpush.bf16.msrb.mxu0 %v1067_v49 }
  0x77   : > { %701 = vmatpush.bf16.msrb.mxu1 %v1075_v51 }
  0xd6   : > { %v502_v54 = vpop.f32.mrf.mxu0 }
  0xd7   : > { %v503_v55 = vadd.f32 %v502_v54, %v329_v53  ;;  %v515_v56 = vpop.f32.mrf.mxu1 }
  0xd9   : > { %v516_v57 = vadd.f32 %v515_v56, %v503_v55 }
  0xdb   : > { %1165 = vtanh.f32 %v516_v57 }
  0xde   : > { %v528_v59 = vpop.f32.mrf.mxu2  ;;  %v504_v62 = vpop.f32.mrf.mxu0 }
  0xdf   : > { %v529_v60 = vadd.f32 %v528_v59, %v330_v58  ;;  %v541_v61 = vpop.f32.mrf.mxu3  ;;  %v517_v63 = vpop.f32.mrf.mxu1 }
  0xe1   : > { %v542_v0 = vadd.f32 %v541_v61, %v529_v60  ;;  %v1166_v1 = vpop.eup %1165 }
  0xe2   : > { %v547_v2 = vpack.c.bf16 %v1166_v1, %v1166_v1 }
  0xe3   : > { %1167 = vtanh.f32 %v542_v0 }
  0xe4   : > { %689 = vmatmul.bf16.vlgmr.msrb.gmra.mxu0 %v547_v2 }
  0xe6   : > { %v530_v3 = vpop.f32.mrf.mxu2 }
  0xe7   : > { %v543_v4 = vpop.f32.mrf.mxu3 }
  0xe9   : > { %v1168_v5 = vpop.eup %1167 }
  0xea   : > { %v548_v6 = vpack.c.bf16 %v1168_v5, %v1168_v5 }
  0xec   : > { %702 = vmatmul.bf16.vlgmr.msrb.gmra.mxu1 %v548_v6 }
 0x161   : > { %v690_v8 = vpop.f32.mrf.mxu0 }
 0x162   : > { %v691_v9 = vadd.f32 %v1164_v7, %v690_v8 }
 0x169   : > { %v703_v10 = vpop.f32.mrf.mxu1  ;;  %v692_v12 = vpop.f32.mrf.mxu0 }
 0x16a   : > { %v704_v11 = vadd.f32 %v703_v10, %v691_v9 }
 0x16c   : > { %707 = vst [vmem:[%s290_s27] sm:$0xff] %v704_v11 }
 0x16d   : > { %1316 = shalt.err (!%p1313_p9)
}
 0x16e   : > { %1097 = dma.vmem_to_hbm [thread:$0]  (%p1478_p13), %s722_s10, 128, %s724_s9, %s709_s25  }
 0x171   : > { %v705_v13 = vpop.f32.mrf.mxu1 }
 0x172 PF: > { %s735_s7 = sand.u32 1, %s1351_s18   ;;  %p1578_p10 = scmp.ge.s32.totalorder %s1363_s21, 2 }
 0x173   : > { %s736_s14 = scalar_lea.sflag [#allocation4], %s735_s7 }
 0x174   : > { %p1114_p11 = pnand %p1578_p10, %p1483_p4 }
 0x176   : > { %p1115_p0 = pneg %p1114_p11 }
 0x178   : > { %1346 = dma.done.wait (%p1115_p0), %s736_s14, 128  }
 0x179   : > { %1348 = vsyncadd (%p1115_p0), %s736_s14, 4294967168  ;;  %p20_p2 = scmp.ge.s32.totalorder %s1458_s24, 4   ;;  %s1579_s18 = smov %s1355_s19 }
 0x17a   : > { %s1580_s19 = smov %s1359_s20  ;;  %s1581_s20 = smov %s1470_s29 }
 0x17b   : > { %s1582_s21 = smov %s1458_s24  ;;  %22 = sbr.rel (!%p20_p2) target bundleno = 7 (0x7), region = 97 }
 0x180   :  { %742 = vsyncpa [#allocation3], 1 }
 0x181   :  { %744 = vsyncpa [#allocation3 + $0x1], 1 }
 0x182   :  { %745 = vsyncpa [#allocation6], 1 }
 0x183   :  { %746 = vsyncpa [#allocation9], 1 }
 0x184   :  { %747 = vsyncpa [#allocation4], 1 }
 0x185   :  { %749 = vsyncpa [#allocation4 + $0x1], 1 }

// kernel: tpu_custom_call.1
= control target key start
LH: loop header
LB: loop body
LE: loop exit
PB: predicated region body
PF: predicated region fallthrough
CT: control target
= control target key end

     0   :  { %10 = vsyncpa [#allocation3], 0  ;;  %s1566_s0 = inlined_call_operand.hbm [shape: f32[16,256], index: 0, kind: input, shape index: {}]   ;;  %s1567_s1 = inlined_call_operand.hbm [shape: bf16[256,256], index: 1, kind: input, shape index: {}]   ;;  %s1568_s2 = inlined_call_operand.hbm [shape: f32[1,256], index: 2, kind: input, shape index: {}]   ;;  %s1569_s3 = inlined_call_operand.hbm [shape: bf16[256,128], index: 3, kind: input, shape index: {}]   ;;  %s1570_s4 = inlined_call_operand.vmem [shape: f32[1,128], index: 4, kind: input, shape index: {}]   ;;  %s1571_s5 = inlined_call_operand.hbm [shape: f32[16,128], index: 5, kind: output, shape index: {}]  }
   0x1   :  { %12 = vsyncpa [#allocation3 + $0x1], 0 }
   0x2   :  { %13 = vsyncpa [#allocation6], 0 }
   0x3   :  { %14 = vsyncpa [#allocation9], 0 }
   0x4   :  { %15 = vsyncpa [#allocation4], 0 }
   0x5   :  { %17 = vsyncpa [#allocation4 + $0x1], 0  ;;  %s1402_s18 = smov 0   ;;  %s1404_s19 = smov 0  }
   0x6   :  { %s1406_s20 = smov 0   ;;  %s1408_s21 = smov 0  }
   0x7 LB: > { %s175_s24 = sshll.u32 %s1567_s1, 4  ;;  %s1426_s25 = sadd.s32 4294967295, %s1363_s21   ;;  %s1363_s21 = sphi %s1408_s21, %s1582_s21   ;;  %s1359_s20 = sphi %s1406_s20, %s1581_s20   ;;  %s1355_s19 = sphi %s1404_s19, %s1580_s19   ;;  %s1351_s18 = sphi %s1402_s18, %s1579_s18   ;;  %s176_s24 = int_to_ptr.hbm [resolvable:$true] %s175_s24 }
   0x8   : > { %p824_p0 = scmp.ge.s32.totalorder %s1363_s21, 1  ;;  %p44_p1 = scmp.eq.s32.totalorder %s1426_s25, 0 }
   0x9   : > { %p164_p2 = scmp.lt.s32.totalorder %s1363_s21, 3  ;;  %s1365_s27 = smov [#allocation5]  }
   0xa   : > { %s177_s28 = sshll.u32 %s1365_s27, 4  ;;  %s190_s6 = sshll.u32 %s1568_s2, 4  ;;  %s178_s28 = int_to_ptr.vmem [resolvable:$true] %s177_s28  ;;  %s191_s6 = int_to_ptr.hbm [resolvable:$true] %s190_s6 }
   0xb   : > { %p1431_p3 = pnand %p824_p0, %p164_p2  ;;  %s201_s10 = sshll.u32 %s1569_s3, 4  ;;  %s202_s10 = int_to_ptr.hbm [resolvable:$true] %s201_s10 }
   0xc   : > { %s1366_s11 = smov [#allocation7]   ;;  %s1367_s13 = smov 128  }
   0xd   : > { %p1099_p4 = pneg %p1431_p3  ;;  %s192_s12 = sshll.u32 %s1366_s11, 4  ;;  %s193_s12 = int_to_ptr.vmem [resolvable:$true] %s192_s12 }
   0xe   : > { %s1368_s14 = smov 8   ;;  %s1369_s15 = smov [#allocation8]  }
   0xf   : > { %p1443_p6 = pnand %p1099_p4, %p44_p1  ;;  %s203_s16 = sshll.u32 %s1369_s15, 4  ;;  %s204_s16 = int_to_ptr.vmem [resolvable:$true] %s203_s16 }
  0x10   : > { %s1370_s17 = smov 64   ;;  %s1371_s22 = smov 4  }
  0x11   : > { %1102 = dma.hbm_to_vmem [thread:$0]  (!%p1443_p6), %s176_s24, 4096, %s178_s28, [#allocation6], %s1367_s13, %s1367_s13, %s1368_s14  }
  0x12   : > { %1105 = dma.hbm_to_vmem [thread:$0]  (!%p1443_p6), %s191_s6, 32, %s193_s12, [#allocation6]  }
  0x13   : > { %1108 = dma.hbm_to_vmem [thread:$0]  (!%p1443_p6), %s202_s10, 2048, %s204_s16, [#allocation9], %s1370_s17, %s1370_s17, %s1371_s22  }
  0x14   : > { %s823_s23 = sadd.s32 4294967294, %s1363_s21   ;;  %s1458_s24 = sadd.s32 1, %s1363_s21  }
  0x15   : > { %s30_s27 = sadd.s32 1, %s1359_s20  ;;  %s27_s28 = ssub.s32 %s1363_s21, %s1458_s24 }
  0x16   : > { %p37_p7 = scmp.ne.s32.totalorder %s1359_s20, %s1355_s19  ;;  %p28_p8 = scmp.eq.s32.totalorder %s27_s28, 0 }
  0x17   : > { %p38_p9 = scmp.eq.s32.totalorder %s1363_s21, 0  ;;  %p43_p10 = scmp.ne.s32.totalorder %s1355_s19, %s1351_s18 }
  0x18   : > { %p151_p11 = scmp.eq.s32.totalorder %s1426_s25, 1  ;;  %p157_p0 = scmp.eq.s32.totalorder %s823_s23, 1 }
  0x19   : > { %s1470_s29 = scalar_select %p28_p8, %s1359_s20, %s30_s27  }
  0x1a   : > { %p1474_p12 = por %p44_p1, %p43_p10  ;;  %p1478_p13 = por %p151_p11, %p37_p7 }
  0x1b   : > { %p39_p2 = por %p38_p9, %p37_p7  ;;  %s220_s7 = sand.u32 1, %s1359_s20  }
  0x1c   : > { %p1483_p4 = por %p157_p0, %p43_p10  ;;  %p1120_p6 = scmp.lt.s32.totalorder %s1363_s21, 2 }
  0x1d   : > { %s829_s9 = sshll.u32 %s220_s7, 4  ;;  %s1034_s10 = sshll.u32 %s1363_s21, 4 }
  0x1e   : > { %s229_s13 = scalar_lea.hbm %s1566_s0, %s1034_s10  ;;  %s224_s15 = scalar_lea.vmem [#allocation2], %s829_s9 }
  0x1f   : > { %s231_s14 = sshll.u32 %s229_s13, 4  ;;  %s233_s16 = sshll.u32 %s224_s15, 4  ;;  %s232_s14 = int_to_ptr.hbm [resolvable:$true] %s231_s14  ;;  %s234_s16 = int_to_ptr.vmem [resolvable:$true] %s233_s16 }
  0x20   : > { %p1492_p8 = pnand %p1120_p6, %p39_p2  ;;  %s221_s22 = scalar_lea.sflag [#allocation3], %s220_s7 }
  0x21   : > { %s1259_s23 = sshra.s32 %s232_s14, 4  ;;  %s1266_s9 = scalar_lea.hbm %s1566_s0, 32  ;;  %s1260_s23 = int_to_ptr.hbm [resolvable:$true] %s1259_s23 }
  0x22   : > { %s1261_s27 = scalar_lea.hbm %s1260_s23, 16  ;;  %p1263_p9 = pneg %p1492_p8 }
  0x23   : > { %p1262_p7 = scmp.ne.s32.totalorder %s1260_s23, %s1261_s27  ;;  %p1267_p0 = scmp.lt.s32.totalorder %s1260_s23, %s1566_s0 }
  0x24   : > { %p1268_p2 = scmp.lt.s32.totalorder %s1266_s9, %s1261_s27 }
  0x25   : > { %p1264_p10 = pnand %p1263_p9, %p1262_p7 }
  0x26   : > { %p1269_p6 = por %p1268_p2, %p1267_p0 }
  0x27   : > { %p1265_p11 = pneg %p1264_p10 }
  0x29   : > { %p1270_p5 = pnand %p1269_p6, %p1265_p11 }
  0x2b   : > { %1273 = shalt.err (!%p1270_p5)
}
  0x2c   : > { %1112 = dma.hbm_to_vmem [thread:$0]  (!%p1492_p8), %s232_s14, 256, %s234_s16, %s221_s22  }
  0x2d   : > { %242 = sbr.rel (%p1431_p3) target bundleno = 370 (0x172), region = 40  ;;  %s1509_s7 = sand.u32 (!%p1431_p3), 1, %s1355_s19  }
  0x2e   : > { %s833_s13 = sshll.u32 (!%p1431_p3), %s1509_s7, 4  ;;  %s245_s15 = scalar_lea.sflag (!%p1431_p3), [#allocation3], %s1509_s7 }
  0x2f   : > { %s1513_s28 = scalar_lea.vmem (!%p1431_p3), [#allocation2], %s833_s13 }
  0x32   : > { %1334 = dma.done.wait (%p1474_p12), %s245_s15, 256  }
  0x33   : > { %1336 = vsyncadd (%p1474_p12), %s245_s15, 4294967040 }
  0x34   : > { %1338 = dma.done.wait (%p44_p1), [#allocation6], 4128  }
  0x35   : > { %1340 = vsyncadd (%p44_p1), [#allocation6], 4294963168 }
  0x36   : > { %1342 = dma.done.wait (%p44_p1), [#allocation9], 2048  }
  0x37   : > { %1344 = vsyncadd (%p44_p1), [#allocation9], 4294965248  ;;  %v896_v0 = vld [vmem:[#allocation5 + $0x70] sm:$0xf]  ;;  %v1050_v1 = vld [vmem:[#allocation5 + $0x74] sm:$0xf0] }
  0x38   : > { %v960_v2 = vld [vmem:[#allocation5 + $0xf0] sm:$0xf]  ;;  %v897_v3 = vor.u32 %v1050_v1, %v896_v0  ;;  %v1066_v4 = vld [vmem:[#allocation5 + $0xf4] sm:$0xf0]  ;;  %v1049_v5 = vld [vmem:[#allocation5 + $0x74] sm:$0xf] }
  0x39   : > { %v898_v6 = vld [vmem:[#allocation5 + $0x78] sm:$0xf0]  ;;  %v961_v7 = vor.u32 %v1066_v4, %v960_v2  ;;  %v1065_v9 = vld [vmem:[#allocation5 + $0xf4] sm:$0xf]  ;;  %v888_v11 = vld [vmem:[#allocation5 + $0x60] sm:$0xf] }
  0x3a   : > { %v901_v8 = vor.u32 %v1049_v5, %v898_v6  ;;  %v962_v10 = vld [vmem:[#allocation5 + $0xf8] sm:$0xf0]  ;;  %493 = vmatpush.bf16.msra.mxu0 %v897_v3  ;;  %v1048_v13 = vld [vmem:[#allocation5 + $0x64] sm:$0xf0]  ;;  %v952_v14 = vld [vmem:[#allocation5 + $0xe0] sm:$0xf] }
  0x3b   : > { %v965_v12 = vor.u32 %v1065_v9, %v962_v10  ;;  %v1064_v15 = vld [vmem:[#allocation5 + $0xe4] sm:$0xf0]  ;;  %506 = vmatpush.bf16.msra.mxu1 %v961_v7  ;;  %v889_v16 = vor.u32 %v1048_v13, %v888_v11  ;;  %v1047_v18 = vld [vmem:[#allocation5 + $0x64] sm:$0xf]  ;;  %v890_v19 = vld [vmem:[#allocation5 + $0x68] sm:$0xf0] }
  0x3c   : > { %519 = vmatpush.bf16.msra.mxu2 %v901_v8  ;;  %v953_v17 = vor.u32 %v1064_v15, %v952_v14  ;;  %v1063_v20 = vld [vmem:[#allocation5 + $0xe4] sm:$0xf]  ;;  %v893_v21 = vor.u32 %v1047_v18, %v890_v19  ;;  %v954_v22 = vld [vmem:[#allocation5 + $0xe8] sm:$0xf0]  ;;  %v880_v23 = vld [vmem:[#allocation5 + $0x50] sm:$0xf] }
  0x3d   : > { %532 = vmatpush.bf16.msra.mxu3 %v965_v12  ;;  %v1046_v24 = vld [vmem:[#allocation5 + $0x54] sm:$0xf0]  ;;  %v957_v25 = vor.u32 %v1063_v20, %v954_v22  ;;  %v944_v26 = vld [vmem:[#allocation5 + $0xd0] sm:$0xf]  ;;  %v1045_v28 = vld [vmem:[#allocation5 + $0x54] sm:$0xf] }
  0x3e   : > { %v1062_v27 = vld [vmem:[#allocation5 + $0xd4] sm:$0xf0]  ;;  %494 = vmatpush.bf16.msra.mxu0 %v889_v16  ;;  %v881_v29 = vor.u32 %v1046_v24, %v880_v23  ;;  %v882_v30 = vld [vmem:[#allocation5 + $0x58] sm:$0xf0]  ;;  %v1061_v31 = vld [vmem:[#allocation5 + $0xd4] sm:$0xf] }
  0x3f   : > { %v946_v32 = vld [vmem:[#allocation5 + $0xd8] sm:$0xf0]  ;;  %507 = vmatpush.bf16.msra.mxu1 %v953_v17  ;;  %v945_v33 = vor.u32 %v1062_v27, %v944_v26  ;;  %v885_v34 = vor.u32 %v1045_v28, %v882_v30  ;;  %v872_v35 = vld [vmem:[#allocation5 + $0x40] sm:$0xf]  ;;  %v1044_v36 = vld [vmem:[#allocation5 + $0x44] sm:$0xf0] }
  0x40   : > { %520 = vmatpush.bf16.msra.mxu2 %v893_v21  ;;  %v936_v37 = vld [vmem:[#allocation5 + $0xc0] sm:$0xf]  ;;  %v949_v38 = vor.u32 %v1061_v31, %v946_v32  ;;  %v1060_v39 = vld [vmem:[#allocation5 + $0xc4] sm:$0xf0]  ;;  %v1043_v40 = vld [vmem:[#allocation5 + $0x44] sm:$0xf]  ;;  %v873_v44 = vor.u32 %v1044_v36, %v872_v35 }
  0x41   : > { %533 = vmatpush.bf16.msra.mxu3 %v957_v25  ;;  %v874_v41 = vld [vmem:[#allocation5 + $0x48] sm:$0xf0]  ;;  %v1059_v42 = vld [vmem:[#allocation5 + $0xc4] sm:$0xf]  ;;  %v937_v45 = vor.u32 %v1060_v39, %v936_v37  ;;  %v864_v47 = vld [vmem:[#allocation5 + $0x30] sm:$0xf] }
  0x42   : > { %v938_v43 = vld [vmem:[#allocation5 + $0xc8] sm:$0xf0]  ;;  %495 = vmatpush.bf16.msra.mxu0 %v881_v29  ;;  %v877_v46 = vor.u32 %v1043_v40, %v874_v41  ;;  %v1042_v48 = vld [vmem:[#allocation5 + $0x34] sm:$0xf0]  ;;  %v928_v49 = vld [vmem:[#allocation5 + $0xb0] sm:$0xf] }
  0x43   : > { %508 = vmatpush.bf16.msra.mxu1 %v945_v33  ;;  %v941_v50 = vor.u32 %v1059_v42, %v938_v43  ;;  %v1058_v51 = vld [vmem:[#allocation5 + $0xb4] sm:$0xf0]  ;;  %v1041_v52 = vld [vmem:[#allocation5 + $0x34] sm:$0xf]  ;;  %v866_v53 = vld [vmem:[#allocation5 + $0x38] sm:$0xf0]  ;;  %v865_v56 = vor.u32 %v1042_v48, %v864_v47 }
  0x44   : > { %521 = vmatpush.bf16.msra.mxu2 %v885_v34  ;;  %v1057_v54 = vld [vmem:[#allocation5 + $0xb4] sm:$0xf]  ;;  %v930_v55 = vld [vmem:[#allocation5 + $0xb8] sm:$0xf0]  ;;  %v929_v57 = vor.u32 %v1058_v51, %v928_v49  ;;  %v869_v58 = vor.u32 %v1041_v52, %v866_v53  ;;  %v856_v59 = vld [vmem:[#allocation5 + $0x20] sm:$0xf] }
  0x45   : > { %534 = vmatpush.bf16.msra.mxu3 %v949_v38  ;;  %v1040_v60 = vld [vmem:[#allocation5 + $0x24] sm:$0xf0]  ;;  %v920_v61 = vld [vmem:[#allocation5 + $0xa0] sm:$0xf]  ;;  %v933_v62 = vor.u32 %v1057_v54, %v930_v55  ;;  %v1039_v0 = vld [vmem:[#allocation5 + $0x24] sm:$0xf] }
  0x46   : > { %496 = vmatpush.bf16.msra.mxu0 %v873_v44  ;;  %v1056_v63 = vld [vmem:[#allocation5 + $0xa4] sm:$0xf0]  ;;  %v858_v1 = vld [vmem:[#allocation5 + $0x28] sm:$0xf0]  ;;  %v1055_v2 = vld [vmem:[#allocation5 + $0xa4] sm:$0xf]  ;;  %v857_v4 = vor.u32 %v1040_v60, %v856_v59 }
  0x47   : > { %509 = vmatpush.bf16.msra.mxu1 %v937_v45  ;;  %v922_v3 = vld [vmem:[#allocation5 + $0xa8] sm:$0xf0]  ;;  %v921_v5 = vor.u32 %v1056_v63, %v920_v61  ;;  %v861_v6 = vor.u32 %v1039_v0, %v858_v1  ;;  %v848_v7 = vld [vmem:[#allocation5 + $0x10] sm:$0xf]  ;;  %v1038_v8 = vld [vmem:[#allocation5 + $0x14] sm:$0xf0] }
  0x48   : > { %522 = vmatpush.bf16.msra.mxu2 %v877_v46  ;;  %v912_v9 = vld [vmem:[#allocation5 + $0x90] sm:$0xf]  ;;  %v925_v10 = vor.u32 %v1055_v2, %v922_v3  ;;  %v1054_v11 = vld [vmem:[#allocation5 + $0x94] sm:$0xf0]  ;;  %v1037_v12 = vld [vmem:[#allocation5 + $0x14] sm:$0xf]  ;;  %v849_v16 = vor.u32 %v1038_v8, %v848_v7 }
  0x49   : > { %535 = vmatpush.bf16.msra.mxu3 %v941_v50  ;;  %v850_v13 = vld [vmem:[#allocation5 + $0x18] sm:$0xf0]  ;;  %v1053_v14 = vld [vmem:[#allocation5 + $0x94] sm:$0xf]  ;;  %v840_v17 = vld [vmem:[#allocation5] sm:$0xf]  ;;  %v913_v18 = vor.u32 %v1054_v11, %v912_v9 }
  0x4a   : > { %497 = vmatpush.bf16.msra.mxu0 %v865_v56  ;;  %v914_v15 = vld [vmem:[#allocation5 + $0x98] sm:$0xf0]  ;;  %v853_v19 = vor.u32 %v1037_v12, %v850_v13  ;;  %v1036_v20 = vld [vmem:[#allocation5 + $0x4] sm:$0xf0]  ;;  %v904_v21 = vld [vmem:[#allocation5 + $0x80] sm:$0xf] }
  0x4b   : > { %510 = vmatpush.bf16.msra.mxu1 %v929_v57  ;;  %v1052_v22 = vld [vmem:[#allocation5 + $0x84] sm:$0xf0]  ;;  %v917_v23 = vor.u32 %v1053_v14, %v914_v15  ;;  %v1035_v24 = vld [vmem:[#allocation5 + $0x4] sm:$0xf]  ;;  %v842_v25 = vld [vmem:[#allocation5 + $0x8] sm:$0xf0]  ;;  %v841_v28 = vor.u32 %v1036_v20, %v840_v17 }
  0x4c   : > { %523 = vmatpush.bf16.msra.mxu2 %v869_v58  ;;  %v1051_v26 = vld [vmem:[#allocation5 + $0x84] sm:$0xf]  ;;  %v906_v27 = vld [vmem:[#allocation5 + $0x88] sm:$0xf0]  ;;  %v905_v30 = vor.u32 %v1052_v22, %v904_v21  ;;  %v845_v31 = vor.u32 %v1035_v24, %v842_v25  ;;  %v1074_v34 = vld [vmem:[#allocation8 + $0x38] sm:$0xff]  ;;  %s1031_s26 = sshll.u32 %s1426_s25, 3 }
  0x4d   : > { %536 = vmatpush.bf16.msra.mxu3 %v933_v62  ;;  %v291_v29 = vld [vmem:[%s1513_s28] sm:$0xff]  ;;  %v292_v32 = vld [vmem:[%s1513_s28 + $0x8] sm:$0xff]  ;;  %v909_v33 = vor.u32 %v1051_v26, %v906_v27  ;;  %s837_s16 = sshll.u32 %s1509_s7, 3  ;;  %s719_s23 = scalar_lea.hbm %s1571_s5, %s1031_s26 }
  0x4e   : > { %498 = vmatpush.bf16.msra.mxu0 %v857_v4  ;;  %v293_v35 = vpack.c.bf16 %v291_v29, %v291_v29  ;;  %v1082_v36 = vld [vmem:[#allocation8 + $0x78] sm:$0xff]  ;;  %v294_v37 = vpack.c.bf16 %v292_v32, %v292_v32  ;;  %v1073_v38 = vld [vmem:[#allocation8 + $0x30] sm:$0xff]  ;;  %v1072_v40 = vld [vmem:[#allocation8 + $0x28] sm:$0xff]  ;;  %s290_s27 = scalar_lea.vmem [#allocation10], %s837_s16  ;;  %s723_s9 = sshll.u32 %s719_s23, 4  ;;  %s724_s9 = int_to_ptr.hbm [resolvable:$true] %s723_s9 }
  0x4f   : > { %511 = vmatpush.bf16.msra.mxu1 %v921_v5  ;;  %v1081_v39 = vld [vmem:[#allocation8 + $0x70] sm:$0xff]  ;;  %v1080_v41 = vld [vmem:[#allocation8 + $0x68] sm:$0xff]  ;;  %v1071_v42 = vld [vmem:[#allocation8 + $0x20] sm:$0xff]  ;;  %s721_s10 = sshll.u32 %s290_s27, 4  ;;  %s709_s25 = scalar_lea.sflag [#allocation4], %s1509_s7  ;;  %s722_s10 = int_to_ptr.vmem [resolvable:$true] %s721_s10 }
  0x50   : > { %524 = vmatpush.bf16.msra.mxu2 %v861_v6  ;;  %v1070_v43 = vld [vmem:[#allocation8 + $0x18] sm:$0xff]  ;;  %v1079_v44 = vld [vmem:[#allocation8 + $0x60] sm:$0xff]  ;;  %v1069_v45 = vld [vmem:[#allocation8 + $0x10] sm:$0xff]  ;;  %s1303_s11 = sshra.s32 %s724_s9, 4  ;;  %s1309_s28 = scalar_lea.hbm %s1571_s5, 16  ;;  %s1304_s11 = int_to_ptr.hbm [resolvable:$true] %s1303_s11 }
  0x51   : > { %537 = vmatpush.bf16.msra.mxu3 %v925_v10  ;;  %v1078_v46 = vld [vmem:[#allocation8 + $0x58] sm:$0xff]  ;;  %v1068_v47 = vld [vmem:[#allocation8 + $0x8] sm:$0xff]  ;;  %v1077_v48 = vld [vmem:[#allocation8 + $0x50] sm:$0xff]  ;;  %s1305_s12 = scalar_lea.hbm %s1304_s11, 8  ;;  %p1310_p12 = scmp.lt.s32.totalorder %s1304_s11, %s1571_s5 }
  0x52   : > { %499 = vmatpush.bf16.msra.mxu0 %v849_v16  ;;  %v1067_v49 = vld [vmem:[#allocation8] sm:$0xff]  ;;  %v1076_v50 = vld [vmem:[#allocation8 + $0x48] sm:$0xff]  ;;  %v327_v52 = vld [vmem:[#allocation7] sm:$0x3]  ;;  %p1306_p1 = scmp.ne.s32.totalorder %s1304_s11, %s1305_s12  ;;  %p1311_p8 = scmp.lt.s32.totalorder %s1309_s28, %s1305_s12 }
  0x53   : > { %512 = vmatpush.bf16.msra.mxu1 %v913_v18  ;;  %v1075_v51 = vld [vmem:[#allocation8 + $0x40] sm:$0xff]  ;;  %v329_v53 = vperm.slane %v327_v52, 0  ;;  %v330_v58 = vperm.slane %v327_v52, 1  ;;  %v1164_v7 = vld [vmem:[%s1570_s4] ss:$0 sm:$0xff] }
  0x54   : > { %525 = vmatpush.bf16.msra.mxu2 %v853_v19  ;;  %p1307_p3 = pnand %p1306_p1, %p1478_p13  ;;  %p1312_p7 = por %p1311_p8, %p1310_p12 }
  0x55   : > { %538 = vmatpush.bf16.msra.mxu3 %v917_v23 }
  0x56   : > { %500 = vmatpush.bf16.msra.mxu0 %v841_v28  ;;  %p1308_p5 = pneg %p1307_p3 }
  0x57   : > { %513 = vmatpush.bf16.msra.mxu1 %v905_v30 }
  0x58   : > { %526 = vmatpush.bf16.msra.mxu2 %v845_v31  ;;  %p1313_p9 = pnand %p1312_p7, %p1308_p5 }
  0x59   : > { %539 = vmatpush.bf16.msra.mxu3 %v909_v33  ;;  %501 = vmatmul.bf16.vlgmr.msra.gmra.mxu0 %v293_v35 }
  0x5a   : > { %681 = vmatpush.bf16.msrb.mxu0 %v1074_v34  ;;  %514 = vmatmul.bf16.vlgmr.msra.gmra.mxu1 %v294_v37 }
  0x5b   : > { %694 = vmatpush.bf16.msrb.mxu1 %v1082_v36  ;;  %527 = vmatmul.bf16.vlgmr.msra.gmra.mxu2 %v293_v35 }
  0x5c   : > { %540 = vmatmul.bf16.vlgmr.msra.gmra.mxu3 %v294_v37 }
  0x5e   : > { %682 = vmatpush.bf16.msrb.mxu0 %v1073_v38 }
  0x5f   : > { %695 = vmatpush.bf16.msrb.mxu1 %v1081_v39 }
  0x62   : > { %683 = vmatpush.bf16.msrb.mxu0 %v1072_v40 }
  0x63   : > { %696 = vmatpush.bf16.msrb.mxu1 %v1080_v41 }
  0x66   : > { %684 = vmatpush.bf16.msrb.mxu0 %v1071_v42 }
  0x67   : > { %697 = vmatpush.bf16.msrb.mxu1 %v1079_v44 }
  0x6a   : > { %685 = vmatpush.bf16.msrb.mxu0 %v1070_v43 }
  0x6b   : > { %698 = vmatpush.bf16.msrb.mxu1 %v1078_v46 }
  0x6e   : > { %686 = vmatpush.bf16.msrb.mxu0 %v1069_v45 }
  0x6f   : > { %699 = vmatpush.bf16.msrb.mxu1 %v1077_v48 }
  0x72   : > { %687 = vmatpush.bf16.msrb.mxu0 %v1068_v47 }
  0x73   : > { %700 = vmatpush.bf16.msrb.mxu1 %v1076_v50 }
  0x76   : > { %688 = vmatpush.bf16.msrb.mxu0 %v1067_v49 }
  0x77   : > { %701 = vmatpush.bf16.msrb.mxu1 %v1075_v51 }
  0xd6   : > { %v502_v54 = vpop.f32.mrf.mxu0 }
  0xd7   : > { %v503_v55 = vadd.f32 %v502_v54, %v329_v53  ;;  %v515_v56 = vpop.f32.mrf.mxu1 }
  0xd9   : > { %v516_v57 = vadd.f32 %v515_v56, %v503_v55 }
  0xdb   : > { %1165 = vtanh.f32 %v516_v57 }
  0xde   : > { %v528_v59 = vpop.f32.mrf.mxu2  ;;  %v504_v62 = vpop.f32.mrf.mxu0 }
  0xdf   : > { %v529_v60 = vadd.f32 %v528_v59, %v330_v58  ;;  %v541_v61 = vpop.f32.mrf.mxu3  ;;  %v517_v63 = vpop.f32.mrf.mxu1 }
  0xe1   : > { %v542_v0 = vadd.f32 %v541_v61, %v529_v60  ;;  %v1166_v1 = vpop.eup %1165 }
  0xe2   : > { %v547_v2 = vpack.c.bf16 %v1166_v1, %v1166_v1 }
  0xe3   : > { %1167 = vtanh.f32 %v542_v0 }
  0xe4   : > { %689 = vmatmul.bf16.vlgmr.msrb.gmra.mxu0 %v547_v2 }
  0xe6   : > { %v530_v3 = vpop.f32.mrf.mxu2 }
  0xe7   : > { %v543_v4 = vpop.f32.mrf.mxu3 }
  0xe9   : > { %v1168_v5 = vpop.eup %1167 }
  0xea   : > { %v548_v6 = vpack.c.bf16 %v1168_v5, %v1168_v5 }
  0xec   : > { %702 = vmatmul.bf16.vlgmr.msrb.gmra.mxu1 %v548_v6 }
 0x161   : > { %v690_v8 = vpop.f32.mrf.mxu0 }
 0x162   : > { %v691_v9 = vadd.f32 %v1164_v7, %v690_v8 }
 0x169   : > { %v703_v10 = vpop.f32.mrf.mxu1  ;;  %v692_v12 = vpop.f32.mrf.mxu0 }
 0x16a   : > { %v704_v11 = vadd.f32 %v703_v10, %v691_v9 }
 0x16c   : > { %707 = vst [vmem:[%s290_s27] sm:$0xff] %v704_v11 }
 0x16d   : > { %1316 = shalt.err (!%p1313_p9)
}
 0x16e   : > { %1097 = dma.vmem_to_hbm [thread:$0]  (%p1478_p13), %s722_s10, 128, %s724_s9, %s709_s25  }
 0x171   : > { %v705_v13 = vpop.f32.mrf.mxu1 }
 0x172 PF: > { %s735_s7 = sand.u32 1, %s1351_s18   ;;  %p1578_p10 = scmp.ge.s32.totalorder %s1363_s21, 2 }
 0x173   : > { %s736_s14 = scalar_lea.sflag [#allocation4], %s735_s7 }
 0x174   : > { %p1114_p11 = pnand %p1578_p10, %p1483_p4 }
 0x176   : > { %p1115_p0 = pneg %p1114_p11 }
 0x178   : > { %1346 = dma.done.wait (%p1115_p0), %s736_s14, 128  }
 0x179   : > { %1348 = vsyncadd (%p1115_p0), %s736_s14, 4294967168  ;;  %p20_p2 = scmp.ge.s32.totalorder %s1458_s24, 4   ;;  %s1579_s18 = smov %s1355_s19 }
 0x17a   : > { %s1580_s19 = smov %s1359_s20  ;;  %s1581_s20 = smov %s1470_s29 }
 0x17b   : > { %s1582_s21 = smov %s1458_s24  ;;  %22 = sbr.rel (!%p20_p2) target bundleno = 7 (0x7), region = 97 }
 0x180   :  { %742 = vsyncpa [#allocation3], 1 }
 0x181   :  { %744 = vsyncpa [#allocation3 + $0x1], 1 }
 0x182   :  { %745 = vsyncpa [#allocation6], 1 }
 0x183   :  { %746 = vsyncpa [#allocation9], 1 }
 0x184   :  { %747 = vsyncpa [#allocation4], 1 }
 0x185   :  { %749 = vsyncpa [#allocation4 + $0x1], 1 }

</bundles_post_ra>
